<compile_context>
chip_gen: v7x
topology: tpu7x:2x2x1
jax: 0.10.0
libtpu: 0.0.40
codegen_flags: <defaults>
</compile_context>

<pallas_src>
import math

import jax
import jax.numpy as jnp
from jax.experimental import pallas as pl
from jax.experimental.pallas import tpu as pltpu

_LANES = 128
_SUBLANES = 8


def _temporal_loss_kernel(p_ref, t_ref, out_ref, p_prev, t_prev, acc_ref):
    """One grid step = one (frame, D-chunk) tile of shape (1, tile_rows, 128)."""
    ti = pl.program_id(1)  # time axis (last grid axis, fastest-varying)

    # Upcast in-kernel (inputs may be bf16); accumulate in f32.
    p = p_ref[...].astype(jnp.float32)
    t = t_ref[...].astype(jnp.float32)

    @pl.when(ti == 0)
    def _():
        acc_ref[...] = jnp.zeros_like(acc_ref)

    @pl.when(ti > 0)
    def _():
        # (pred[t] - pred[t-1]) - (target[t] - target[t-1]), squared, accumulated
        # element-wise -> steady-state loop is pure VPU work.
        d = (p - p_prev[...]) - (t - t_prev[...])
        acc_ref[...] += d * d

    # Stash the current frame tile for the next time step (each frame read once).
    p_prev[...] = p
    t_prev[...] = t

    @pl.when(ti == pl.num_programs(1) - 1)
    def _():
        tr = acc_ref.shape[1]
        # Sum groups of 8 sublanes (cross-vreg VPU adds) -> (1, 8, 128) partial.
        out_ref[...] = jnp.sum(
            acc_ref[...].reshape(1, tr // _SUBLANES, _SUBLANES, _LANES), axis=1
        )


def temporal_consistency_loss(
    pred_sequence: jax.Array, target_sequence: jax.Array, *, tile_rows: int = 1024
) -> jax.Array:
    """Pallas TPU implementation of TemporalConsistencyLoss.forward."""
    assert pred_sequence.shape == target_sequence.shape
    T = pred_sequence.shape[0]
    assert T >= 2, "need at least two frames along the leading axis"

    D = math.prod(pred_sequence.shape[1:])
    assert D >= 1

    pred = pred_sequence.reshape(T, D)
    targ = target_sequence.reshape(T, D)

    # Lane-dense tiling: [T, total_rows, 128], rows per tile a multiple of 8.
    rows = -(-D // _LANES)
    rows8 = -(-rows // _SUBLANES) * _SUBLANES
    tr = max(_SUBLANES, min(int(tile_rows), rows8))
    tr = -(-tr // _SUBLANES) * _SUBLANES          # multiple of 8
    n_d = -(-rows8 // tr)                          # number of D-chunks
    total_rows = n_d * tr
    d_pad = total_rows * _LANES

    if d_pad != D:
        # Zero padding is exact: padded diffs are 0 and we divide by the true count.
        pad = d_pad - D
        pred = jnp.pad(pred, ((0, 0), (0, pad)))
        targ = jnp.pad(targ, ((0, 0), (0, pad)))

    pred = pred.reshape(T, total_rows, _LANES)
    targ = targ.reshape(T, total_rows, _LANES)

    partials = pl.pallas_call(
        _temporal_loss_kernel,
        out_shape=jax.ShapeDtypeStruct((n_d, _SUBLANES, _LANES), jnp.float32),
        grid_spec=pltpu.PrefetchScalarGridSpec(
            num_scalar_prefetch=0,
            grid=(n_d, T),
            in_specs=[
                pl.BlockSpec((1, tr, _LANES), lambda d, t: (t, d, 0)),  # pred[t] chunk d
                pl.BlockSpec((1, tr, _LANES), lambda d, t: (t, d, 0)),  # target[t] chunk d
            ],
            out_specs=pl.BlockSpec((1, _SUBLANES, _LANES), lambda d, t: (d, 0, 0)),
            scratch_shapes=[
                pltpu.VMEM((1, tr, _LANES), jnp.float32),  # previous pred tile
                pltpu.VMEM((1, tr, _LANES), jnp.float32),  # previous target tile
                pltpu.VMEM((1, tr, _LANES), jnp.float32),  # squared-diff accumulator
            ],
        ),
        compiler_params=pltpu.CompilerParams(
            # D-chunks are independent -> shard across TensorCores on v7x;
            # time axis is a carried reduction -> arbitrary.
            dimension_semantics=("parallel", "arbitrary"),
        ),
    )(pred, targ)

    inv_count = 1.0 / float((T - 1) * D)
    return jnp.sum(partials) * jnp.float32(inv_count)


if __name__ == "__main__":
    # Small video-like sequence: [T, C, H, W]
    T, C, H, W = 8, 4, 16, 16
    key = jax.random.PRNGKey(0)
    k1, k2 = jax.random.split(key)
    pred = jax.random.normal(k1, (T, C, H, W), dtype=jnp.float32)
    target = jax.random.normal(k2, (T, C, H, W), dtype=jnp.float32)

    loss = temporal_consistency_loss(pred, target)
    loss = jax.block_until_ready(loss)

    # Reference check in plain JAX (mirrors the PyTorch forward).
    pred_diff = pred[1:] - pred[:-1]
    target_diff = target[1:] - target[:-1]
    ref = jnp.mean((pred_diff - target_diff) ** 2)
    assert jnp.allclose(loss, ref, rtol=1e-5, atol=1e-5), (loss, ref)

    print("KERNEL_OK")
</pallas_src>

<mosaic_0001>
module attributes {stable_mosaic.version = 11 : i64} {
  func.func @_temporal_loss_kernel(%arg0: i32, %arg1: i32, %arg2: memref<1x8x128xf32, #tpu.memory_space<vmem>>, %arg3: memref<1x8x128xf32, #tpu.memory_space<vmem>>, %arg4: memref<1x8x128xf32, #tpu.memory_space<vmem>>, %arg5: memref<1x8x128xf32, #tpu.memory_space<vmem>>, %arg6: memref<1x8x128xf32, #tpu.memory_space<vmem>>, %arg7: memref<1x8x128xf32, #tpu.memory_space<vmem>>) attributes {dimension_semantics = [#tpu.dimension_semantics<parallel>, #tpu.dimension_semantics<arbitrary>], iteration_bounds = array<i64: 1, 8>, scalar_prefetch = 0 : i64, scratch_operands = 3 : i64, tpu.core_type = #tpu.core_type<tc>, window_params = [{transform_indices = @transform_0, window_bounds = array<i64: 1, 8, 128>}, {transform_indices = @transform_1, window_bounds = array<i64: 1, 8, 128>}, {transform_indices = @transform_2, window_bounds = array<i64: 1, 8, 128>}]} {
    %c0 = arith.constant 0 : index
    %c0_0 = arith.constant 0 : index
    %c0_1 = arith.constant 0 : index
    %0 = vector.load %arg2[%c0, %c0_0, %c0_1] : memref<1x8x128xf32, #tpu.memory_space<vmem>>, vector<1x8x128xf32>
    %c0_2 = arith.constant 0 : index
    %c0_3 = arith.constant 0 : index
    %c0_4 = arith.constant 0 : index
    %1 = vector.load %arg3[%c0_2, %c0_3, %c0_4] : memref<1x8x128xf32, #tpu.memory_space<vmem>>, vector<1x8x128xf32>
    %c0_i32 = arith.constant 0 : i32
    %2 = arith.cmpi eq, %arg1, %c0_i32 : i32
    %3 = arith.extui %2 : i1 to i32
    %c0_i32_5 = arith.constant 0 : i32
    %4 = arith.cmpi ne, %3, %c0_i32_5 : i32
    scf.if %4 {
      %cst = arith.constant 0.000000e+00 : f32
      %13 = vector.broadcast %cst : f32 to vector<1x8x128xf32>
      %c0_15 = arith.constant 0 : index
      %c0_16 = arith.constant 0 : index
      %c0_17 = arith.constant 0 : index
      %14 = vector.load %arg7[%c0_15, %c0_16, %c0_17] : memref<1x8x128xf32, #tpu.memory_space<vmem>>, vector<1x8x128xf32>
      tpu.vector_store %arg7[%c0_15, %c0_16, %c0_17], %13 {strides = array<i32>} : memref<1x8x128xf32, #tpu.memory_space<vmem>>, vector<1x8x128xf32>,
    } else {
    }
    %c0_i32_6 = arith.constant 0 : i32
    %5 = arith.cmpi sgt, %arg1, %c0_i32_6 : i32
    %6 = arith.extui %5 : i1 to i32
    %c0_i32_7 = arith.constant 0 : i32
    %7 = arith.cmpi ne, %6, %c0_i32_7 : i32
    scf.if %7 {
      %c0_15 = arith.constant 0 : index
      %c0_16 = arith.constant 0 : index
      %c0_17 = arith.constant 0 : index
      %13 = vector.load %arg5[%c0_15, %c0_16, %c0_17] : memref<1x8x128xf32, #tpu.memory_space<vmem>>, vector<1x8x128xf32>
      %14 = arith.subf %0, %13 : vector<1x8x128xf32>
      %c0_18 = arith.constant 0 : index
      %c0_19 = arith.constant 0 : index
      %c0_20 = arith.constant 0 : index
      %15 = vector.load %arg6[%c0_18, %c0_19, %c0_20] : memref<1x8x128xf32, #tpu.memory_space<vmem>>, vector<1x8x128xf32>
      %16 = arith.subf %1, %15 : vector<1x8x128xf32>
      %17 = arith.subf %14, %16 : vector<1x8x128xf32>
      %c0_21 = arith.constant 0 : index
      %c0_22 = arith.constant 0 : index
      %c0_23 = arith.constant 0 : index
      %18 = vector.load %arg7[%c0_21, %c0_22, %c0_23] : memref<1x8x128xf32, #tpu.memory_space<vmem>>, vector<1x8x128xf32>
      %19 = arith.mulf %17, %17 : vector<1x8x128xf32>
      %20 = arith.addf %18, %19 : vector<1x8x128xf32>
      %c0_24 = arith.constant 0 : index
      %c0_25 = arith.constant 0 : index
      %c0_26 = arith.constant 0 : index
      %21 = vector.load %arg7[%c0_24, %c0_25, %c0_26] : memref<1x8x128xf32, #tpu.memory_space<vmem>>, vector<1x8x128xf32>
      tpu.vector_store %arg7[%c0_24, %c0_25, %c0_26], %20 {strides = array<i32>} : memref<1x8x128xf32, #tpu.memory_space<vmem>>, vector<1x8x128xf32>,
    } else {
    }
    %c0_8 = arith.constant 0 : index
    %c0_9 = arith.constant 0 : index
    %c0_10 = arith.constant 0 : index
    %8 = vector.load %arg5[%c0_8, %c0_9, %c0_10] : memref<1x8x128xf32, #tpu.memory_space<vmem>>, vector<1x8x128xf32>
    tpu.vector_store %arg5[%c0_8, %c0_9, %c0_10], %0 {strides = array<i32>} : memref<1x8x128xf32, #tpu.memory_space<vmem>>, vector<1x8x128xf32>,
    %c0_11 = arith.constant 0 : index
    %c0_12 = arith.constant 0 : index
    %c0_13 = arith.constant 0 : index
    %9 = vector.load %arg6[%c0_11, %c0_12, %c0_13] : memref<1x8x128xf32, #tpu.memory_space<vmem>>, vector<1x8x128xf32>
    tpu.vector_store %arg6[%c0_11, %c0_12, %c0_13], %1 {strides = array<i32>} : memref<1x8x128xf32, #tpu.memory_space<vmem>>, vector<1x8x128xf32>,
    %c7_i32 = arith.constant 7 : i32
    %10 = arith.cmpi eq, %arg1, %c7_i32 : i32
    %11 = arith.extui %10 : i1 to i32
    %c0_i32_14 = arith.constant 0 : i32
    %12 = arith.cmpi ne, %11, %c0_i32_14 : i32
    scf.if %12 {
      %c0_15 = arith.constant 0 : index
      %c0_16 = arith.constant 0 : index
      %c0_17 = arith.constant 0 : index
      %13 = vector.load %arg7[%c0_15, %c0_16, %c0_17] : memref<1x8x128xf32, #tpu.memory_space<vmem>>, vector<1x8x128xf32>
      %14 = vector.shape_cast %13 : vector<1x8x128xf32> to vector<1x1x8x128xf32>
      %cst = arith.constant dense<0.000000e+00> : vector<1x8x128xf32>
      %15 = vector.multi_reduction <add>, %14, %cst [1] : vector<1x1x8x128xf32> to vector<1x8x128xf32>
      %c0_18 = arith.constant 0 : index
      %c0_19 = arith.constant 0 : index
      %c0_20 = arith.constant 0 : index
      %16 = vector.load %arg4[%c0_18, %c0_19, %c0_20] : memref<1x8x128xf32, #tpu.memory_space<vmem>>, vector<1x8x128xf32>
      tpu.vector_store %arg4[%c0_18, %c0_19, %c0_20], %15 {strides = array<i32>} : memref<1x8x128xf32, #tpu.memory_space<vmem>>, vector<1x8x128xf32>,
    } else {
    }
    return
  }
  func.func @transform_0(%arg0: i32, %arg1: i32) -> (i32, i32, i32) {
    %c0_i32 = arith.constant 0 : i32
    %c0_i32_0 = arith.constant 0 : i32
    return %arg1, %arg0, %c0_i32 : i32, i32, i32
  }
  func.func @transform_1(%arg0: i32, %arg1: i32) -> (i32, i32, i32) {
    %c0_i32 = arith.constant 0 : i32
    %c0_i32_0 = arith.constant 0 : i32
    return %arg1, %arg0, %c0_i32 : i32, i32, i32
  }
  func.func @transform_2(%arg0: i32, %arg1: i32) -> (i32, i32, i32) {
    %c0_i32 = arith.constant 0 : i32
    %c0_i32_0 = arith.constant 0 : i32
    %c0_i32_1 = arith.constant 0 : i32
    return %arg0, %c0_i32, %c0_i32_0 : i32, i32, i32
  }
}

</mosaic_0001>

<bundles_post_ra>
// kernel: tpu_custom_call.1
= control target key start
LH: loop header
LB: loop body
LE: loop exit
PB: predicated region body
PF: predicated region fallthrough
CT: control target
= control target key end

     0   :  { %7 = vsyncpa [#allocation6], 0  ;;  %s781_s0 = inlined_call_operand.hbm [shape: f32[8,8,128], index: 0, kind: input, shape index: {}]   ;;  %s782_s1 = inlined_call_operand.hbm [shape: f32[8,8,128], index: 1, kind: input, shape index: {}]   ;;  %s783_s2 = inlined_call_operand.hbm [shape: f32[1,8,128], index: 2, kind: output, shape index: {}]  }
   0x1   :  { %9 = vsyncpa [#allocation6 + $0x1], 0 }
   0x2   :  { %10 = vsyncpa [#allocation9], 0 }
   0x3   :  { %12 = vsyncpa [#allocation9 + $0x1], 0 }
   0x4   :  { %13 = vsyncpa [#allocation7], 0  ;;  %s581_s9 = smov 0   ;;  %s583_s10 = smov 0  }
   0x5   :  { %s585_s11 = smov 0   ;;  %s587_s12 = smov 0  }
   0x6   :  { %s589_s13 = smov 0   ;;  %s591_s14 = smov 0  }
   0x7 LB: > { %s331_s15 = sadd.s32 4294967295, %s560_s14   ;;  %s28_s16 = sadd.s32 1, %s556_s13  ;;  %s560_s14 = sphi %s591_s14, %s19_s14   ;;  %s556_s13 = sphi %s589_s13, %s798_s13   ;;  %s552_s12 = sphi %s587_s12, %s797_s12   ;;  %s548_s11 = sphi %s585_s11, %s796_s11   ;;  %s544_s10 = sphi %s583_s10, %s795_s10   ;;  %s540_s9 = sphi %s581_s9, %s794_s9  }
   0x8   : > { %p29_p0 = scmp.ge.s32.totalorder %s28_s16, 8  ;;  %s40_s17 = sadd.s32 1, %s548_s11 }
   0x9   : > { %p47_p1 = scmp.ne.s32.totalorder %s548_s11, %s544_s10  ;;  %p48_p2 = scmp.eq.s32.totalorder %s560_s14, 0 }
   0xa   : > { %s800_s16 = smov (%p29_p0, %s28_s16), 0  ;;  %p53_p4 = scmp.ne.s32.totalorder %s544_s10, %s540_s9 }
   0xb   : > { %p617_p3 = por %p48_p2, %p47_p1  ;;  %s35_s19 = ssub.s32 %s556_s13, %s800_s16 }
   0xc   : > { %p54_p5 = scmp.eq.s32.totalorder %s331_s15, 0  ;;  %p38_p6 = scmp.eq.s32.totalorder %s35_s19, 0 }
   0xd   : > { %p363_p8 = scmp.lt.s32.totalorder %s560_s14, 8  ;;  %s635_s22 = sand.u32 1, %s548_s11  }
   0xe   : > { %p626_p7 = por %p54_p5, %p53_p4  ;;  %s335_s23 = sshll.u32 %s556_s13, 7 }
   0xf   : > { %s632_s21 = scalar_select %p38_p6, %s548_s11, %s40_s17  }
  0x10   : > { %s786_s20 = scalar_select %p626_p7, 1, 0 }
  0x11   : > { %s334_s24 = sshll.u32 %s635_s22, 3  ;;  %s644_s27 = scalar_lea.hbm %s781_s0, %s335_s23 }
  0x12   : > { %s135_s28 = scalar_lea.vmem [#allocation5], %s334_s24  ;;  %p650_p9 = pnand %p363_p8, %p617_p3 }
  0x13   : > { %s143_s29 = sshll.u32 %s135_s28, 4  ;;  %s132_s3 = scalar_lea.sflag [#allocation6], %s635_s22  ;;  %s654_s29 = int_to_ptr.vmem [resolvable:$true] %s143_s29 }
  0x14   : > { %s416_s4 = scalar_lea.hbm %s644_s27, 128  ;;  %p418_p13 = pneg %p650_p9 }
  0x15   : > { %p417_p12 = scmp.ne.s32.totalorder %s644_s27, %s416_s4  ;;  %s421_s7 = scalar_lea.hbm %s781_s0, 1024 }
  0x16   : > { %p422_p2 = scmp.lt.u32.totalorder %s644_s27, %s781_s0  ;;  %p423_p3 = scmp.lt.u32.totalorder %s421_s7, %s416_s4 }
  0x17   : > { %p419_p0 = pnand %p418_p13, %p417_p12  ;;  %p425_p5 = scmp.lt.u32.totalorder %s416_s4, %s644_s27 }
  0x18   : > { %p424_p4 = por %p423_p3, %p422_p2 }
  0x19   : > { %p420_p1 = pneg %p419_p0 }
  0x1a   : > { %p426_p6 = por %p425_p5, %p424_p4 }
  0x1c   : > { %p427_p8 = pnand %p426_p6, %p420_p1 }
  0x1e   : > { %430 = shalt.err (!%p427_p8)
}
  0x1f   : > { %s431_s17 = scalar_lea.vmem %s654_s29, 128  ;;  %s562_s18 = smov [#allocation5]  }
  0x20   : > { %p432_p12 = scmp.ne.s32.totalorder %s654_s29, %s431_s17  ;;  %s436_s19 = sshll.u32 %s562_s18, 4  ;;  %s437_s19 = int_to_ptr.vmem [resolvable:$false] %s436_s19 }
  0x21   : > { %s438_s25 = scalar_lea.vmem %s437_s19, 256  ;;  %p439_p11 = scmp.lt.s32.totalorder %s654_s29, %s437_s19 }
  0x22   : > { %p434_p0 = pnand %p432_p12, %p418_p13  ;;  %p440_p2 = scmp.lt.s32.totalorder %s438_s25, %s431_s17 }
  0x24   : > { %p435_p10 = pneg %p434_p0  ;;  %p441_p3 = por %p440_p2, %p439_p11 }
  0x26   : > { %p442_p4 = pnand %p441_p3, %p435_p10 }
  0x28   : > { %445 = shalt.err (!%p442_p4)
}
  0x29   : > { %359 = dma.hbm_to_vmem [thread:$0]  (!%p650_p9), %s644_s27, 128, %s654_s29, %s132_s3  }
  0x2a   : > { %p788_p1 = scmp.lt.s32.totalorder %s560_s14, 9  ;;  %p789_p5 = scmp.ge.s32.totalorder %s560_s14, 1 }
  0x2b   : > { %s697_s5 = scalar_lea.hbm %s782_s1, %s335_s23  ;;  %s154_s6 = scalar_lea.vmem [#allocation8], %s334_s24 }
  0x2c   : > { %p688_p6 = pnand %p789_p5, %p788_p1  ;;  %s162_s7 = sshll.u32 %s154_s6, 4  ;;  %s163_s7 = int_to_ptr.vmem [resolvable:$true] %s162_s7 }
  0x2d   : > { %s151_s27 = scalar_lea.sflag [#allocation9], %s635_s22  ;;  %s446_s29 = scalar_lea.hbm %s697_s5, 128 }
  0x2e   : > { %s790_s26 = scalar_select %p688_p6, 1, 0 }
  0x2f   : > { %p447_p10 = scmp.ne.s32.totalorder %s697_s5, %s446_s29  ;;  %s451_s23 = scalar_lea.hbm %s782_s1, 1024 }
  0x30   : > { %p452_p12 = scmp.lt.u32.totalorder %s697_s5, %s782_s1  ;;  %p453_p0 = scmp.lt.u32.totalorder %s451_s23, %s446_s29 }
  0x31   : > { %p449_p11 = pnand %p447_p10, %p418_p13  ;;  %p455_p3 = scmp.lt.u32.totalorder %s446_s29, %s697_s5 }
  0x32   : > { %p454_p2 = por %p453_p0, %p452_p12 }
  0x33   : > { %p450_p8 = pneg %p449_p11 }
  0x34   : > { %p456_p4 = por %p455_p3, %p454_p2 }
  0x36   : > { %p457_p1 = pnand %p456_p4, %p450_p8 }
  0x38   : > { %460 = shalt.err (!%p457_p1)
}
  0x39   : > { %s461_s22 = scalar_lea.vmem %s163_s7, 128  ;;  %s563_s24 = smov [#allocation8]  }
  0x3a   : > { %p462_p5 = scmp.ne.s32.totalorder %s163_s7, %s461_s22  ;;  %s466_s18 = sshll.u32 %s563_s24, 4  ;;  %s467_s18 = int_to_ptr.vmem [resolvable:$false] %s466_s18 }
  0x3b   : > { %s468_s19 = scalar_lea.vmem %s467_s18, 256  ;;  %p469_p7 = scmp.lt.s32.totalorder %s163_s7, %s467_s18 }
  0x3c   : > { %p464_p10 = pnand %p462_p5, %p418_p13  ;;  %p470_p6 = scmp.lt.s32.totalorder %s468_s19, %s461_s22 }
  0x3e   : > { %p465_p11 = pneg %p464_p10  ;;  %p471_p0 = por %p470_p6, %p469_p7 }
  0x40   : > { %p472_p12 = pnand %p471_p0, %p465_p11 }
  0x42   : > { %475 = shalt.err (!%p472_p12)
}
  0x43   : > { %362 = dma.hbm_to_vmem [thread:$0]  (!%p650_p9), %s697_s5, 128, %s163_s7, %s151_s27  }
  0x44   : > { %p791_p8 = scmp.ne.s32.totalorder %s790_s26, 0 }
  0x45   : > { %s173_s25 = sand.u32 (!%p791_p8), 1, %s544_s10   ;;  %p792_p13 = scmp.ne.s32.totalorder (!%p791_p8), %s786_s20, 0 }
  0x46   : > { %171 = sbr.rel (%p791_p8) target bundleno = 134 (0x86), region = 28  ;;  %s339_s28 = sshll.u32 (!%p791_p8), %s173_s25, 3 }
  0x47   : > { %s174_s4 = scalar_lea.sflag (!%p791_p8), [#allocation6], %s173_s25  ;;  %s177_s6 = scalar_lea.vmem (!%p791_p8), [#allocation5], %s339_s28 }
  0x4d   : > { %527 = dma.done.wait (%p792_p13), %s174_s4, 128  }
  0x4e   : > { %529 = vsyncadd (%p792_p13), %s174_s4, 4294967168  ;;  %s183_s29 = scalar_lea.sflag [#allocation9], %s173_s25  ;;  %s186_s3 = scalar_lea.vmem [#allocation8], %s339_s28 }
  0x4f   : > { %531 = dma.done.wait (%p792_p13), %s183_s29, 128  }
  0x50   : > { %533 = vsyncadd (%p792_p13), %s183_s29, 4294967168  ;;  %v207_v0 = vld [vmem:[%s177_s6] sm:$0xff]  ;;  %v208_v1 = vld [vmem:[%s186_s3] sm:$0xff]  ;;  %p341_p7 = scmp.ne.s32.totalorder %s552_s12, 0 }
  0x51   : > { %v564_v2 = vmov (!%p341_p7), 0.0  }
  0x52   : > { %212 = sbr.rel (%p341_p7) target bundleno = 89 (0x59), region = 40  ;;  %213 = vst [vmem:[#allocation4] sm:$0xff] (!%p341_p7), %v564_v2 }
  0x59 PF: > { %p342_p9 = scmp.le.s32.totalorder %s552_s12, 0 }
  0x5a   : > { %v218_v3 = vld [vmem:[#allocation2] sm:$0xff] (!%p342_p9)  ;;  %v220_v4 = vld [vmem:[#allocation3] sm:$0xff] (!%p342_p9)  ;;  %v223_v8 = vld [vmem:[#allocation4] sm:$0xff] (!%p342_p9) }
  0x5b   : > { %217 = sbr.rel (%p342_p9) target bundleno = 100 (0x64), region = 44  ;;  %v219_v5 = vsub.f32 (!%p342_p9), %v207_v0, %v218_v3  ;;  %v221_v6 = vsub.f32 (!%p342_p9), %v208_v1, %v220_v4 }
  0x5d   : > { %v222_v7 = vsub.f32 (!%p342_p9), %v219_v5, %v221_v6 }
  0x5f   : > { %v224_v9 = vmul.f32 (!%p342_p9), %v222_v7, %v222_v7 }
  0x61   : > { %v225_v10 = vadd.f32 (!%p342_p9), %v224_v9, %v223_v8 }
  0x63   : > { %226 = vst [vmem:[#allocation4] sm:$0xff] %v225_v10 }
  0x64 PF: > { %227 = vst [vmem:[#allocation2] sm:$0xff] %v207_v0  ;;  %228 = vst [vmem:[#allocation3] sm:$0xff] %v208_v1  ;;  %p343_p6 = scmp.ne.s32.totalorder %s552_s12, 7 }
  0x66   : > { %232 = sbr.rel (%p343_p6) target bundleno = 109 (0x6d), region = 48 }
  0x6a   : > { %v233_v11 = vld [vmem:[#allocation4] sm:$0xff] (!%p343_p6) }
  0x6b   : > { %235 = vst [vmem:[#allocation10] sm:$0xff] (!%p343_p6), %v233_v11 }
  0x6d PF: > { %p737_p2 = scmp.eq.s32.totalorder %s331_s15, 7  ;;  %s565_s30 = smov [#allocation10]  }
  0x6e   : > { %s245_s26 = sshll.u32 %s565_s30, 4  ;;  %s246_s26 = int_to_ptr.vmem [resolvable:$true] %s245_s26 }
  0x6f   : > { %s476_s5 = scalar_lea.vmem %s246_s26, 128  ;;  %p483_p5 = scmp.lt.s32.totalorder %s246_s26, %s246_s26 }
  0x70   : > { %p477_p3 = scmp.ne.s32.totalorder %s246_s26, %s476_s5  ;;  %p484_p10 = scmp.lt.s32.totalorder %s476_s5, %s476_s5 }
  0x72   : > { %p478_p4 = pnand %p477_p3, %p737_p2  ;;  %p485_p11 = por %p484_p10, %p483_p5 }
  0x74   : > { %p479_p1 = pneg %p478_p4 }
  0x76   : > { %p486_p0 = pnand %p485_p11, %p479_p1 }
  0x78   : > { %489 = shalt.err (!%p486_p0)
}
  0x79   : > { %s490_s15 = scalar_lea.hbm %s783_s2, 128 }
  0x7a   : > { %p491_p12 = scmp.ne.s32.totalorder %s783_s2, %s490_s15  ;;  %p496_p7 = scmp.lt.u32.totalorder %s490_s15, %s783_s2 }
  0x7c   : > { %p492_p8 = pnand %p491_p12, %p737_p2 }
  0x7e   : > { %p493_p13 = pneg %p492_p8 }
  0x80   : > { %p498_p9 = pnand %p496_p7, %p493_p13 }
  0x82   : > { %501 = shalt.err (!%p498_p9)
}
  0x83   : > { %353 = dma.vmem_to_hbm [thread:$0]  (%p737_p2), %s246_s26, 128, %s783_s2, [#allocation7]  }
  0x84   : > { %535 = dma.done.wait (%p737_p2), [#allocation7], 128  }
  0x85   : > { %537 = vsyncadd (%p737_p2), [#allocation7], 4294967168 }
  0x86 PF: > { %s19_s14 = sadd.s32 1, %s560_s14   ;;  %s794_s9 = smov %s544_s10 }
  0x87   : > { %p16_p6 = scmp.ge.s32.totalorder %s19_s14, 10   ;;  %s795_s10 = smov %s548_s11 }
  0x88   : > { %s796_s11 = smov %s632_s21  ;;  %s797_s12 = smov %s556_s13 }
  0x89   : > { %s798_s13 = smov %s800_s16  ;;  %18 = sbr.rel (!%p16_p6) target bundleno = 7 (0x7), region = 91 }
  0x90   :  { %258 = vsyncpa [#allocation6], 1 }
  0x91   :  { %260 = vsyncpa [#allocation6 + $0x1], 1 }
  0x92   :  { %261 = vsyncpa [#allocation9], 1 }
  0x93   :  { %263 = vsyncpa [#allocation9 + $0x1], 1 }
  0x94   :  { %264 = vsyncpa [#allocation7], 1 }
  0x95   :  { %266 = vsyncpa [#allocation7 + $0x1], 1 }

</bundles_post_ra>
